<compile_context>
chip_gen: v5e
topology: v5e:2x2
jax: 0.10.0
libtpu: 0.0.40
codegen_flags: <defaults>
</compile_context>

<pallas_src>
import functools

import jax
import jax.numpy as jnp
from jax import lax
from jax.experimental import pallas as pl
from jax.experimental.pallas import tpu as pltpu

LN_EPS = 1e-5
_SQRT_HALF = 0.7071067811865476


def _round_up(x, m):
    return (x + m - 1) // m * m


def _default_tile_m():
    """Generation-aware default token-tile height."""
    try:
        kind = jax.devices()[0].device_kind.lower()
    except Exception:
        return 1024
    if "v5 lite" in kind or "v5lite" in kind or "v5e" in kind:
        return 512      # v5e: low roofline knee (~240 flop/B); 512 suffices.
    if "v6" in kind:
        return 2048     # v6e: 128 MiB VMEM, ~650 flop/B knee -> go big.
    return 1024         # v7x (64 MiB VMEM/TC) and unknown chips: safe default.


def _vmem_limit_bytes(tm, tv, C, out_itemsize):
    """Estimate the pipelined VMEM footprint and add headroom."""
    est = (2 * tm * C * 2            # x tile, bf16, double-buffered
           + 2 * C * C * 2           # W_dense, bf16, double-buffered
           + 2 * 3 * C * 4           # dense bias + LN gamma/beta, f32
           + 2 * tv * C * 2          # W_vocab tile, bf16, double-buffered
           + 2 * tv * 4              # vocab bias tile, f32
           + 2 * tm * tv * out_itemsize   # logits tile, double-buffered
           + tm * C * 2)             # h scratch, bf16
    # 1.5x headroom for compiler-internal scratch; defaults keep this under
    # 64 MiB (v7x) and well under 128 MiB (v5e/v6e).
    return int(min(max(est * 3 // 2, 32 * 1024 * 1024), 100 * 1024 * 1024))


def _mlm_head_kernel(x_ref, wd_ref, bd_ref, g_ref, beta_ref,
                     wo_ref, bo_ref, o_ref, h_ref):
    # Grid: (i over token tiles [parallel], j over vocab tiles [arbitrary]).
    # The dense -> gelu -> layernorm hidden state only depends on the token
    # tile, so compute it once at j == 0 and cache it (bf16) in VMEM scratch.
    # NOTE: this is only correct while j is the innermost, sequentially
    # iterated grid axis and stays marked "arbitrary".
    @pl.when(pl.program_id(1) == 0)
    def _():
        h = lax.dot_general(
            x_ref[...], wd_ref[...],
            dimension_numbers=(((1,), (1,)), ((), ())),   # x @ W_dense^T
            preferred_element_type=jnp.float32) + bd_ref[...]
        # exact (erf-based) GELU, matching torch.nn.functional.gelu
        h = 0.5 * h * (1.0 + lax.erf(h * _SQRT_HALF))
        mean = jnp.mean(h, axis=-1, keepdims=True)
        var = jnp.mean((h - mean) ** 2, axis=-1, keepdims=True)
        h = (h - mean) * lax.rsqrt(var + LN_EPS)
        h = h * g_ref[...] + beta_ref[...]
        h_ref[...] = h.astype(h_ref.dtype)

    # Vocab projection: (tm, C) x (tv, C)^T -> (tm, tv), f32 accumulation,
    # stored directly in the output dtype (no wrapper cast pass).
    logits = lax.dot_general(
        h_ref[...], wo_ref[...],
        dimension_numbers=(((1,), (1,)), ((), ())),       # h @ W_vocab^T
        preferred_element_type=jnp.float32) + bo_ref[...]
    o_ref[...] = logits.astype(o_ref.dtype)


@functools.partial(jax.jit,
                   static_argnames=("tm", "tv", "out_dtype", "vmem_limit"))
def _mlm_head_impl(encoder_out, w_dense, b_dense, ln_gamma, ln_beta,
                   w_vocab, b_vocab, *, tm, tv, out_dtype, vmem_limit):
    T, B, C = encoder_out.shape
    V = w_vocab.shape[0]
    M = B * T
    m_pad = _round_up(M, tm)
    v_pad = _round_up(V, tv)

    # transpose(0, 1) + flatten tokens.  Cast to bf16 FIRST so the transpose
    # copy and the pad copy move half the bytes; zero padding on bf16 is exact.
    # TODO(synk): folding the (T,B,C)->(B*T,C) permutation into the x BlockSpec
    # index_map would remove this copy entirely, but the row order is strided
    # in the original layout and not expressible with a rectangular index_map.
    x = encoder_out.astype(jnp.bfloat16)
    x = jnp.transpose(x, (1, 0, 2)).reshape(M, C)
    if m_pad != M:
        x = jnp.pad(x, ((0, m_pad - M), (0, 0)))

    # Weights in bf16 for the MXU; W_vocab kept in its native (V, C) layout
    # (no transpose pass), cast before padding so the pad copy is bf16 too.
    wd = w_dense.astype(jnp.bfloat16)                    # (C, C) [out, in]
    wo = w_vocab.astype(jnp.bfloat16)                    # (V, C)
    bo = b_vocab.astype(jnp.float32)
    if v_pad != V:
        wo = jnp.pad(wo, ((0, v_pad - V), (0, 0)))
        bo = jnp.pad(bo, ((0, v_pad - V),))
    bd = b_dense.reshape(1, C).astype(jnp.float32)
    g = ln_gamma.reshape(1, C).astype(jnp.float32)
    beta = ln_beta.reshape(1, C).astype(jnp.float32)
    bo = bo.reshape(1, v_pad)

    grid = (m_pad // tm, v_pad // tv)
    out = pl.pallas_call(
        _mlm_head_kernel,
        out_shape=jax.ShapeDtypeStruct((m_pad, v_pad), out_dtype),
        grid_spec=pltpu.PrefetchScalarGridSpec(
            num_scalar_prefetch=0,
            grid=grid,
            in_specs=[
                pl.BlockSpec((tm, C), lambda i, j: (i, 0)),   # x tile (bf16)
                pl.BlockSpec((C, C), lambda i, j: (0, 0)),    # dense W (out,in)
                pl.BlockSpec((1, C), lambda i, j: (0, 0)),    # dense bias
                pl.BlockSpec((1, C), lambda i, j: (0, 0)),    # LN gamma
                pl.BlockSpec((1, C), lambda i, j: (0, 0)),    # LN beta
                pl.BlockSpec((tv, C), lambda i, j: (j, 0)),   # vocab W tile
                pl.BlockSpec((1, tv), lambda i, j: (0, j)),   # vocab bias tile
            ],
            out_specs=pl.BlockSpec((tm, tv), lambda i, j: (i, j)),
            scratch_shapes=[pltpu.VMEM((tm, C), jnp.bfloat16)],
        ),
        compiler_params=pltpu.CompilerParams(
            dimension_semantics=("parallel", "arbitrary"),
            vmem_limit_bytes=vmem_limit),
    )(x, wd, bd, g, beta, wo, bo)

    if m_pad != M or v_pad != V:
        out = out[:M, :V]
    # TODO(synk): masked_tokens boolean gather (encoder_out[masked_tokens, :])
    # is data-dependent; not implemented in-kernel (masked_tokens=None path).
    return out.reshape(B, T, V), None


def mlm_head_forward(encoder_out, w_dense, b_dense, ln_gamma, ln_beta,
                     w_vocab, b_vocab, *, tm=None, tv=None, out_dtype=None):
    """encoder_out: (T, B, C). Returns (logits (B, T, V), None)."""
    T, B, C = encoder_out.shape
    V = w_vocab.shape[0]
    M = B * T

    if tm is None:
        tm = _default_tile_m()
    if tv is None:
        tv = 2048

    # Clamp tiles to the (aligned) problem size.
    tm = min(tm, _round_up(M, 8))
    tv = min(tv, _round_up(V, 128))
    # Keep >= 2 token tiles when M is big enough so both v7x TensorCores get
    # work on the "parallel" i axis.
    if M >= 512:
        tm = min(tm, _round_up(-(-M // 2), 256))

    out_dtype = jnp.dtype(encoder_out.dtype if out_dtype is None else out_dtype)
    vmem_limit = _vmem_limit_bytes(tm, tv, C, out_dtype.itemsize)

    return _mlm_head_impl(encoder_out, w_dense, b_dense, ln_gamma, ln_beta,
                          w_vocab, b_vocab, tm=tm, tv=tv,
                          out_dtype=out_dtype, vmem_limit=vmem_limit)


def _reference(encoder_out, w_dense, b_dense, ln_gamma, ln_beta,
               w_vocab, b_vocab, *, bf16_weights):
    wdt = jnp.bfloat16 if bf16_weights else jnp.float32
    x = jnp.transpose(encoder_out, (1, 0, 2)).astype(jnp.float32)
    h = lax.dot_general(
        x.astype(wdt), w_dense.astype(wdt),
        dimension_numbers=(((2,), (1,)), ((), ())),
        preferred_element_type=jnp.float32) + b_dense
    h = 0.5 * h * (1.0 + lax.erf(h * _SQRT_HALF))
    mean = jnp.mean(h, axis=-1, keepdims=True)
    var = jnp.mean((h - mean) ** 2, axis=-1, keepdims=True)
    h = (h - mean) * lax.rsqrt(var + LN_EPS)
    h = h * ln_gamma + ln_beta
    return lax.dot_general(
        h.astype(wdt), w_vocab.astype(wdt),
        dimension_numbers=(((2,), (1,)), ((), ())),
        preferred_element_type=jnp.float32) + b_vocab


if __name__ == "__main__":
    # Deliberately non-tile-aligned: M = B*T = 18, V = 250 exercises padding.
    T, B, C, V = 9, 2, 32, 250   # seq, batch, embed_dim, output_dim (vocab)

    key = jax.random.PRNGKey(0)
    k0, k1, k2, k3 = jax.random.split(key, 4)

    encoder_out = jax.random.normal(k0, (T, B, C), dtype=jnp.float32)

    # Deterministic parameter init (shapes from MLMHead.__init__):
    w_dense = jax.random.normal(k1, (C, C), dtype=jnp.float32) * (1.0 / C ** 0.5)
    b_dense = jax.random.normal(k2, (C,), dtype=jnp.float32) * 0.02
    ln_gamma = jnp.ones((C,), dtype=jnp.float32)
    ln_beta = jnp.zeros((C,), dtype=jnp.float32)
    w_vocab = jax.random.normal(k3, (V, C), dtype=jnp.float32) * (1.0 / C ** 0.5)
    b_vocab = jnp.zeros((V,), dtype=jnp.float32)

    logits, extra = mlm_head_forward(encoder_out, w_dense, b_dense,
                                     ln_gamma, ln_beta, w_vocab, b_vocab)
    logits = jax.block_until_ready(logits)

    assert logits.shape == (B, T, V)
    assert logits.dtype == encoder_out.dtype
    assert extra is None

    # Matched-precision reference (same bf16 casts, f32 accumulation).
    ref_bf16 = _reference(encoder_out, w_dense, b_dense, ln_gamma, ln_beta,
                          w_vocab, b_vocab, bf16_weights=True)
    # Pure f32 reference (PyTorch semantics) with a bf16-appropriate tolerance.
    ref_f32 = _reference(encoder_out, w_dense, b_dense, ln_gamma, ln_beta,
                         w_vocab, b_vocab, bf16_weights=False)

    assert jnp.allclose(logits, ref_bf16, atol=1e-2, rtol=1e-2), \
        "mismatch vs bf16-weight reference"
    assert jnp.allclose(logits, ref_f32, atol=6e-2, rtol=6e-2), \
        "mismatch vs f32 reference"
    print("KERNEL_OK")
</pallas_src>

<mosaic_0001>
module attributes {stable_mosaic.version = 11 : i64} {
  func.func @_mlm_head_kernel(%arg0: i32, %arg1: i32, %arg2: memref<24x32xbf16, #tpu.memory_space<vmem>>, %arg3: memref<32x32xbf16, #tpu.memory_space<vmem>>, %arg4: memref<1x32xf32, #tpu.memory_space<vmem>>, %arg5: memref<1x32xf32, #tpu.memory_space<vmem>>, %arg6: memref<1x32xf32, #tpu.memory_space<vmem>>, %arg7: memref<256x32xbf16, #tpu.memory_space<vmem>>, %arg8: memref<1x256xf32, #tpu.memory_space<vmem>>, %arg9: memref<24x256xf32, #tpu.memory_space<vmem>>, %arg10: memref<24x32xbf16, #tpu.memory_space<vmem>>) attributes {dimension_semantics = [#tpu.dimension_semantics<parallel>, #tpu.dimension_semantics<arbitrary>], iteration_bounds = array<i64: 1, 1>, scalar_prefetch = 0 : i64, scratch_operands = 1 : i64, tpu.core_type = #tpu.core_type<tc>, window_params = [{transform_indices = @transform_0, window_bounds = array<i64: 24, 32>}, {pipeline_mode = #tpu.pipeline_mode<synchronous>, transform_indices = @transform_1, window_bounds = array<i64: 32, 32>}, {pipeline_mode = #tpu.pipeline_mode<synchronous>, transform_indices = @transform_2, window_bounds = array<i64: 1, 32>}, {pipeline_mode = #tpu.pipeline_mode<synchronous>, transform_indices = @transform_3, window_bounds = array<i64: 1, 32>}, {pipeline_mode = #tpu.pipeline_mode<synchronous>, transform_indices = @transform_4, window_bounds = array<i64: 1, 32>}, {transform_indices = @transform_5, window_bounds = array<i64: 256, 32>}, {transform_indices = @transform_6, window_bounds = array<i64: 1, 256>}, {transform_indices = @transform_7, window_bounds = array<i64: 24, 256>}]} {
    %c0_i32 = arith.constant 0 : i32
    %0 = arith.cmpi eq, %arg1, %c0_i32 : i32
    %1 = arith.extui %0 : i1 to i32
    %c0_i32_0 = arith.constant 0 : i32
    %2 = arith.cmpi ne, %1, %c0_i32_0 : i32
    scf.if %2 {
      %c0_8 = arith.constant 0 : index
      %c0_9 = arith.constant 0 : index
      %10 = vector.load %arg2[%c0_8, %c0_9] : memref<24x32xbf16, #tpu.memory_space<vmem>>, vector<24x32xbf16>
      %c0_10 = arith.constant 0 : index
      %c0_11 = arith.constant 0 : index
      %11 = vector.load %arg3[%c0_10, %c0_11] : memref<32x32xbf16, #tpu.memory_space<vmem>>, vector<32x32xbf16>
      %cst_12 = arith.constant dense<0.000000e+00> : vector<24x32xf32>
      %12 = tpu.matmul %10, %11, %cst_12 {dimension_numbers = #tpu.dot_dimension_numbers<[1], [1], [0], [0], [0, 0, 1, 0], [], []>} : vector<24x32xbf16>, vector<32x32xbf16>, vector<24x32xf32> -> vector<24x32xf32>
      %c0_13 = arith.constant 0 : index
      %c0_14 = arith.constant 0 : index
      %13 = vector.load %arg4[%c0_13, %c0_14] : memref<1x32xf32, #tpu.memory_space<vmem>>, vector<1x32xf32>
      %14 = vector.broadcast %13 : vector<1x32xf32> to vector<24x32xf32>
      %15 = arith.addf %12, %14 : vector<24x32xf32>
      %cst_15 = arith.constant 5.000000e-01 : f32
      %16 = vector.broadcast %cst_15 : f32 to vector<24x32xf32>
      %17 = arith.mulf %16, %15 : vector<24x32xf32>
      %cst_16 = arith.constant 0.707106769 : f32
      %18 = vector.broadcast %cst_16 : f32 to vector<24x32xf32>
      %19 = arith.mulf %15, %18 : vector<24x32xf32>
      %20 = math.erf %19 : vector<24x32xf32>
      %cst_17 = arith.constant 1.000000e+00 : f32
      %21 = vector.broadcast %cst_17 : f32 to vector<24x32xf32>
      %22 = arith.addf %21, %20 : vector<24x32xf32>
      %23 = arith.mulf %17, %22 : vector<24x32xf32>
      %cst_18 = arith.constant dense<0.000000e+00> : vector<24xf32>
      %24 = vector.multi_reduction <add>, %23, %cst_18 [1] : vector<24x32xf32> to vector<24xf32>
      %25 = vector.shape_cast %24 : vector<24xf32> to vector<24x1xf32>
      %cst_19 = arith.constant 3.200000e+01 : f32
      %26 = vector.broadcast %cst_19 : f32 to vector<24x1xf32>
      %27 = arith.divf %25, %26 : vector<24x1xf32>
      %28 = vector.broadcast %27 : vector<24x1xf32> to vector<24x32xf32>
      %29 = arith.subf %23, %28 : vector<24x32xf32>
      %30 = arith.mulf %29, %29 : vector<24x32xf32>
      %cst_20 = arith.constant dense<0.000000e+00> : vector<24xf32>
      %31 = vector.multi_reduction <add>, %30, %cst_20 [1] : vector<24x32xf32> to vector<24xf32>
      %32 = vector.shape_cast %31 : vector<24xf32> to vector<24x1xf32>
      %cst_21 = arith.constant 3.200000e+01 : f32
      %33 = vector.broadcast %cst_21 : f32 to vector<24x1xf32>
      %34 = arith.divf %32, %33 : vector<24x1xf32>
      %35 = vector.broadcast %27 : vector<24x1xf32> to vector<24x32xf32>
      %36 = arith.subf %23, %35 : vector<24x32xf32>
      %cst_22 = arith.constant 9.99999974E-6 : f32
      %37 = vector.broadcast %cst_22 : f32 to vector<24x1xf32>
      %38 = arith.addf %34, %37 : vector<24x1xf32>
      %39 = math.rsqrt %38 : vector<24x1xf32>
      %40 = vector.broadcast %39 : vector<24x1xf32> to vector<24x32xf32>
      %41 = arith.mulf %36, %40 : vector<24x32xf32>
      %c0_23 = arith.constant 0 : index
      %c0_24 = arith.constant 0 : index
      %42 = vector.load %arg5[%c0_23, %c0_24] : memref<1x32xf32, #tpu.memory_space<vmem>>, vector<1x32xf32>
      %43 = vector.broadcast %42 : vector<1x32xf32> to vector<24x32xf32>
      %44 = arith.mulf %41, %43 : vector<24x32xf32>
      %c0_25 = arith.constant 0 : index
      %c0_26 = arith.constant 0 : index
      %45 = vector.load %arg6[%c0_25, %c0_26] : memref<1x32xf32, #tpu.memory_space<vmem>>, vector<1x32xf32>
      %46 = vector.broadcast %45 : vector<1x32xf32> to vector<24x32xf32>
      %47 = arith.addf %44, %46 : vector<24x32xf32>
      %48 = arith.truncf %47 : vector<24x32xf32> to vector<24x32xbf16>
      %c0_27 = arith.constant 0 : index
      %c0_28 = arith.constant 0 : index
      %49 = vector.load %arg10[%c0_27, %c0_28] : memref<24x32xbf16, #tpu.memory_space<vmem>>, vector<24x32xbf16>
      tpu.vector_store %arg10[%c0_27, %c0_28], %48 {strides = array<i32>} : memref<24x32xbf16, #tpu.memory_space<vmem>>, vector<24x32xbf16>,
    } else {
    }
    %c0 = arith.constant 0 : index
    %c0_1 = arith.constant 0 : index
    %3 = vector.load %arg10[%c0, %c0_1] : memref<24x32xbf16, #tpu.memory_space<vmem>>, vector<24x32xbf16>
    %c0_2 = arith.constant 0 : index
    %c0_3 = arith.constant 0 : index
    %4 = vector.load %arg7[%c0_2, %c0_3] : memref<256x32xbf16, #tpu.memory_space<vmem>>, vector<256x32xbf16>
    %cst = arith.constant dense<0.000000e+00> : vector<24x256xf32>
    %5 = tpu.matmul %3, %4, %cst {dimension_numbers = #tpu.dot_dimension_numbers<[1], [1], [0], [0], [0, 0, 1, 0], [], []>} : vector<24x32xbf16>, vector<256x32xbf16>, vector<24x256xf32> -> vector<24x256xf32>
    %c0_4 = arith.constant 0 : index
    %c0_5 = arith.constant 0 : index
    %6 = vector.load %arg8[%c0_4, %c0_5] : memref<1x256xf32, #tpu.memory_space<vmem>>, vector<1x256xf32>
    %7 = vector.broadcast %6 : vector<1x256xf32> to vector<24x256xf32>
    %8 = arith.addf %5, %7 : vector<24x256xf32>
    %c0_6 = arith.constant 0 : index
    %c0_7 = arith.constant 0 : index
    %9 = vector.load %arg9[%c0_6, %c0_7] : memref<24x256xf32, #tpu.memory_space<vmem>>, vector<24x256xf32>
    tpu.vector_store %arg9[%c0_6, %c0_7], %8 {strides = array<i32>} : memref<24x256xf32, #tpu.memory_space<vmem>>, vector<24x256xf32>,
    return
  }
  func.func @transform_0(%arg0: i32, %arg1: i32) -> (i32, i32) {
    %c0_i32 = arith.constant 0 : i32
    %c0_i32_0 = arith.constant 0 : i32
    return %arg0, %c0_i32 : i32, i32
  }
  func.func @transform_1(%arg0: i32, %arg1: i32) -> (i32, i32) {
    %c0_i32 = arith.constant 0 : i32
    %c0_i32_0 = arith.constant 0 : i32
    %c0_i32_1 = arith.constant 0 : i32
    return %c0_i32, %c0_i32_0 : i32, i32
  }
  func.func @transform_2(%arg0: i32, %arg1: i32) -> (i32, i32) {
    %c0_i32 = arith.constant 0 : i32
    %c0_i32_0 = arith.constant 0 : i32
    %c0_i32_1 = arith.constant 0 : i32
    return %c0_i32, %c0_i32_0 : i32, i32
  }
  func.func @transform_3(%arg0: i32, %arg1: i32) -> (i32, i32) {
    %c0_i32 = arith.constant 0 : i32
    %c0_i32_0 = arith.constant 0 : i32
    %c0_i32_1 = arith.constant 0 : i32
    return %c0_i32, %c0_i32_0 : i32, i32
  }
  func.func @transform_4(%arg0: i32, %arg1: i32) -> (i32, i32) {
    %c0_i32 = arith.constant 0 : i32
    %c0_i32_0 = arith.constant 0 : i32
    %c0_i32_1 = arith.constant 0 : i32
    return %c0_i32, %c0_i32_0 : i32, i32
  }
  func.func @transform_5(%arg0: i32, %arg1: i32) -> (i32, i32) {
    %c0_i32 = arith.constant 0 : i32
    %c0_i32_0 = arith.constant 0 : i32
    return %arg1, %c0_i32 : i32, i32
  }
  func.func @transform_6(%arg0: i32, %arg1: i32) -> (i32, i32) {
    %c0_i32 = arith.constant 0 : i32
    %c0_i32_0 = arith.constant 0 : i32
    return %c0_i32, %arg1 : i32, i32
  }
  func.func @transform_7(%arg0: i32, %arg1: i32) -> (i32, i32) {
    %c0_i32 = arith.constant 0 : i32
    return %arg0, %arg1 : i32, i32
  }
}

</mosaic_0001>

<bundles_post_ra>
// kernel: _mlm_head_impl.1
= control target key start
LH: loop header
LB: loop body
LE: loop exit
PB: predicated region body
PF: predicated region fallthrough
CT: control target
= control target key end

     0   :  { %vm60_vm0 = vcmask 261120   ;;  %s924_s1 = inlined_call_operand.vmem [shape: bf16[32,32], index: 1, kind: input, shape index: {}]   ;;  %s925_s2 = inlined_call_operand.vmem [shape: f32[1,32], index: 2, kind: input, shape index: {}]   ;;  %s926_s0 = inlined_call_operand.vmem [shape: bf16[24,32], index: 0, kind: input, shape index: {}]   ;;  %s927_s3 = inlined_call_operand.vmem [shape: f32[1,32], index: 3, kind: input, shape index: {}]   ;;  %s928_s4 = inlined_call_operand.vmem [shape: f32[1,32], index: 4, kind: input, shape index: {}]   ;;  %s929_s5 = inlined_call_operand.vmem [shape: bf16[256,32], index: 5, kind: input, shape index: {}]   ;;  %s930_s6 = inlined_call_operand.vmem [shape: f32[1,256], index: 6, kind: input, shape index: {}]   ;;  %s931_s7 = inlined_call_operand.vmem [shape: f32[24,256], index: 7, kind: output, shape index: {}]  }
   0x1   :  { %v638_v0 = vld [vmem:[%s924_s1 + $0x8] sm:$0xff]  ;;  %v637_v2 = vld [vmem:[%s924_s1] sm:$0xff] }
   0x2   :  { %v71_v1 = vsel %vm60_vm0, %v638_v0, 0  ;;  %v68_v3 = vsel %vm60_vm0, %v637_v2, 0  ;;  %v636_v4 = vld [vmem:[%s926_s0] sm:$0xff]  ;;  %v33_v5 = vld [vmem:[%s926_s0 + $0x8] sm:$0xf] }
   0x3   :  { %79 = vmatpush.bf16.xpose.msra.mxu0 %v71_v1  ;;  %v47_v6 = vunpack.c.l.b16 %v33_v5  ;;  %v665_v8 = vld [vmem:[%s925_s2] ss:$0 sm:$0xff] }
   0x5   :  { %v49_v7 = vpack.c.b16 %v47_v6, %v47_v6 }
   0xb   :  { %80 = vmatpush.bf16.xpose.msra.mxu0 %v68_v3 }
  0x12   :  { %559 = vmatmul.msk.bf16.vlgmr.msra.gmra.mxu0 %vm60_vm0, %v636_v4 }
  0x22   :  { %560 = vmatmul.msk.bf16.gmra.mxu0 %vm60_vm0, %v49_v7 }
  0x8f   :  { %v82_v9 = vpop.f32.mrf.mxu0 }
  0x90   :  { %v742_v10 = vadd.f32 %v665_v8, %v82_v9 }
  0x92   :  { %v745_v11 = vmul.f32 0.70710677, %v742_v10 }
  0x94   :  { %v97_v12 = vmul.f32 %v745_v11, %v745_v11 }
  0x96   :  { %v98_v13 = vmin.f32 %v97_v12, 16.0 }
  0x97   :  { %v84_v14 = vpop.f32.mrf.mxu0 }
  0x98   :  { %v99_v15 = vmul.f32 2.1237322e-06, %v98_v13  ;;  %v749_v16 = vadd.f32 %v665_v8, %v84_v14  ;;  %v110_v17 = vmul.f32 3.8918573e-05, %v98_v13 }
  0x9a   :  { %v100_v18 = vadd.f32 0.00028619796, %v99_v15  ;;  %v752_v19 = vmul.f32 0.70710677, %v749_v16  ;;  %v111_v20 = vadd.f32 0.001143296, %v110_v17 }
  0x9c   :  { %v101_v21 = vmul.f32 %v100_v18, %v98_v13  ;;  %v137_v22 = vmul.f32 %v752_v19, %v752_v19  ;;  %v112_v23 = vmul.f32 %v111_v20, %v98_v13 }
  0x9e   :  { %v756_v24 = vmin.f32 %v137_v22, 16.0  ;;  %v113_v26 = vadd.f32 0.014752088, %v112_v23  ;;  %v102_v27 = vadd.f32 0.0036580483, %v101_v21 }
  0x9f   :  { %v87_v25 = vpop.f32.mrf.mxu0 }
  0xa0   :  { %v139_v28 = vmul.f32 2.1237322e-06, %v756_v24  ;;  %v759_v29 = vadd.f32 %v665_v8, %v87_v25  ;;  %v150_v30 = vmul.f32 3.8918573e-05, %v756_v24  ;;  %v114_v31 = vmul.f32 %v113_v26, %v98_v13 }
  0xa1   :  { %v103_v36 = vmul.f32 %v102_v27, %v98_v13 }
  0xa2   :  { %v140_v32 = vadd.f32 0.00028619796, %v139_v28  ;;  %v763_v33 = vmul.f32 0.70710677, %v759_v29  ;;  %v115_v34 = vadd.f32 0.112945676, %v114_v31 }
  0xa3   :  { %v151_v35 = vadd.f32 0.001143296, %v150_v30  ;;  %v104_v45 = vadd.f32 0.05243302, %v103_v36 }
  0xa4   :  { %v141_v37 = vmul.f32 %v140_v32, %v756_v24  ;;  %v177_v38 = vmul.f32 %v763_v33, %v763_v33  ;;  %v116_v39 = vmul.f32 %v115_v34, %v98_v13 }
  0xa5   :  { %v152_v40 = vmul.f32 %v151_v35, %v756_v24  ;;  %v105_v54 = vmul.f32 %v104_v45, %v98_v13 }
  0xa6   :  { %v769_v41 = vmin.f32 %v177_v38, 16.0  ;;  %v117_v43 = vadd.f32 0.4994258, %v116_v39  ;;  %v142_v46 = vadd.f32 0.0036580483, %v141_v37 }
  0xa7   :  { %v89_v42 = vpop.f32.mrf.mxu0  ;;  %v153_v44 = vadd.f32 0.014752088, %v152_v40  ;;  %v106_v60 = vadd.f32 0.18741608, %v105_v54 }
  0xa8   :  { %v179_v47 = vmul.f32 2.1237322e-06, %v769_v41  ;;  %v118_v48 = vmul.f32 %v117_v43, %v98_v13  ;;  %v190_v50 = vmul.f32 3.8918573e-05, %v769_v41  ;;  %v143_v56 = vmul.f32 %v142_v46, %v756_v24 }
  0xa9   :  { %v154_v49 = vmul.f32 %v153_v44, %v756_v24  ;;  %v107_v4 = vmul.f32 %v106_v60, %v98_v13 }
  0xaa   :  { %v180_v51 = vadd.f32 0.00028619796, %v179_v47  ;;  %v119_v52 = vadd.f32 1.0, %v118_v48  ;;  %v191_v55 = vadd.f32 0.001143296, %v190_v50 }
  0xab   :  { %v155_v53 = vadd.f32 0.112945676, %v154_v49  ;;  %v144_v63 = vadd.f32 0.05243302, %v143_v56  ;;  %v108_v17 = vadd.f32 1.1283791, %v107_v4 }
  0xac   :  { %668 = vrcp.f32 %v119_v52  ;;  %v181_v57 = vmul.f32 %v180_v51, %v769_v41  ;;  %v192_v59 = vmul.f32 %v191_v55, %v769_v41  ;;  %v131_v14 = vand.u32 2147483648, %v119_v52 }
  0xad   :  { %v156_v58 = vmul.f32 %v155_v53, %v756_v24  ;;  %v145_v7 = vmul.f32 %v144_v63, %v756_v24  ;;  %v129_v20 = vand.u32 2147483647, %v119_v52  ;;  %vm125_vm2 = vweird.f32 %v119_v52 }
  0xae   :  { %v193_v62 = vadd.f32 0.014752088, %v192_v59  ;;  %v182_v0 = vadd.f32 0.0036580483, %v181_v57  ;;  %v132_v25 = vor.u32 1.1754944e-38, %v131_v14  ;;  %v109_v28 = vmul.f32 %v108_v17, %v745_v11 }
  0xaf   :  { %v157_v61 = vadd.f32 0.4994258, %v156_v58  ;;  %v146_v21 = vadd.f32 0.18741608, %v145_v7  ;;  %vm130_vm4 = vcmp.eq.f32.partialorder %v129_v20, 8.507059e+37  ;;  %v91_v11 = vmul.f32 0.5, %v742_v10 }
  0xb0   :  { %v194_v2 = vmul.f32 %v193_v62, %v769_v41  ;;  %v183_v9 = vmul.f32 %v182_v0, %v769_v41  ;;  %v92_v58 = vmul.f32 0.5, %v749_v16  ;;  %v647_v20 = vld [vmem:[%s929_s5 + $0x38] sm:$0xff] }
  0xb1   :  { %v158_v1 = vmul.f32 %v157_v61, %v756_v24  ;;  %v147_v31 = vmul.f32 %v146_v21, %v756_v24  ;;  %v475_v21 = vsel %vm60_vm0, %v647_v20, 0 }
  0xb2   :  { %v669_v3 = vpop.eup %668  ;;  %v195_v8 = vadd.f32 0.112945676, %v194_v2  ;;  %v184_v23 = vadd.f32 0.05243302, %v183_v9  ;;  %501 = vmatpush.bf16.xpose.msra.mxu1 %v475_v21  ;;  %656 = vmatpush.bf16.xpose.msra.mxu3 %v475_v21 }
  0xb3   :  { %v121_v5 = vmul.f32 %v669_v3, %v119_v52  ;;  %v159_v6 = vadd.f32 1.0, %v158_v1  ;;  %vm126_vm1 = vweird.f32 %v669_v3  ;;  %v148_v42 = vadd.f32 1.1283791, %v147_v31 }
  0xb4   :  { %v196_v15 = vmul.f32 %v195_v8, %v769_v41  ;;  %vm127_vm3 = vmor %vm125_vm2, %vm126_vm1  ;;  %v185_v35 = vmul.f32 %v184_v23, %v769_v41 }
  0xb5   :  { %v122_v12 = vsub.f32 1.0, %v121_v5  ;;  %670 = vrcp.f32 %v159_v6  ;;  %v171_v40 = vand.u32 2147483648, %v159_v6  ;;  %v169_v44 = vand.u32 2147483647, %v159_v6 }
  0xb6   :  { %v197_v22 = vadd.f32 0.4994258, %v196_v15  ;;  %v186_v45 = vadd.f32 0.18741608, %v185_v35  ;;  %vm165_vm6 = vweird.f32 %v159_v6  ;;  %v149_v49 = vmul.f32 %v148_v42, %v752_v19 }
  0xb7   :  { %v123_v18 = vmul.f32 %v669_v3, %v122_v12  ;;  %v172_v48 = vor.u32 1.1754944e-38, %v171_v40  ;;  %vm170_vm8 = vcmp.eq.f32.partialorder %v169_v44, 8.507059e+37  ;;  %v682_v12 = vmov 32.0  }
  0xb8   :  { %v198_v26 = vmul.f32 %v197_v22, %v769_v41  ;;  %v187_v52 = vmul.f32 %v186_v45, %v769_v41  ;;  %v645_v45 = vld [vmem:[%s929_s5 + $0x28] sm:$0xff] }
  0xb9   :  { %v124_v13 = vadd.f32 %v669_v3, %v123_v18 }
  0xba   :  { %v199_v37 = vadd.f32 1.0, %v198_v26  ;;  %v188_v59 = vadd.f32 1.1283791, %v187_v52  ;;  %v643_v52 = vld [vmem:[%s929_s5 + $0x18] sm:$0xff] }
  0xbb   :  { %v671_v27 = vpop.eup %670  ;;  %v128_v30 = vsel %vm127_vm3, %v669_v3, %v124_v13  ;;  %v646_v13 = vld [vmem:[%s929_s5 + $0x30] sm:$0xff]  ;;  %vm313_vm3 = vcmask 257024  }
  0xbc   :  { %v133_v32 = vsel %vm130_vm4, %v132_v25, %v128_v30  ;;  %v161_v34 = vmul.f32 %v671_v27, %v159_v6  ;;  %672 = vrcp.f32 %v199_v37  ;;  %vm166_vm5 = vweird.f32 %v671_v27  ;;  %v654_v25 = vld [vmem:[%s929_s5 + $0x70] sm:$0xff] }
  0xbd   :  { %v134_v36 = vmul.f32 %v133_v32, %v109_v28  ;;  %vm167_vm7 = vmor %vm165_vm6, %vm166_vm5  ;;  %v211_v60 = vand.u32 2147483648, %v199_v37  ;;  %v209_v62 = vand.u32 2147483647, %v199_v37  ;;  %vm205_vm10 = vweird.f32 %v199_v37 }
  0xbe   :  { %v162_v38 = vsub.f32 1.0, %v161_v34  ;;  %v189_v1 = vmul.f32 %v188_v59, %v763_v33  ;;  %v93_v6 = vmul.f32 0.5, %v759_v29  ;;  %674 = vrcp.f32 %v682_v12  ;;  %v655_v29 = vld [vmem:[%s929_s5 + $0x78] sm:$0xff] }
  0xbf   :  { %v561_v39 = vclamps-f32 %v134_v36, 1.0  ;;  %v212_v41 = vor.u32 1.1754944e-38, %v211_v60  ;;  %vm210_vm12 = vcmp.eq.f32.partialorder %v209_v62, 8.507059e+37  ;;  %v499_v22 = vsel %vm60_vm0, %v655_v29, 0 }
  0xc0   :  { %v163_v43 = vmul.f32 %v671_v27, %v162_v38  ;;  %519 = vmatpush.bf16.xpose.msra.mxu2 %v499_v22  ;;  %v472_v30 = vsel %vm60_vm0, %v646_v13, 0  ;;  %v496_v31 = vsel %vm60_vm0, %v654_v25, 0  ;;  %v667_v22 = vld [vmem:[%s928_s4] ss:$0 sm:$0xff] }
  0xc1   :  { %v217_v46 = vadd.f32 1.0, %v561_v39  ;;  %502 = vmatpush.bf16.xpose.msra.mxu1 %v472_v30  ;;  %657 = vmatpush.bf16.xpose.msra.mxu3 %v472_v30 }
  0xc2   :  { %v164_v47 = vadd.f32 %v671_v27, %v163_v43  ;;  %v673_v51 = vpop.eup %672 }
  0xc3   :  { %v788_v24 = vmul.f32 %v217_v46, %v91_v11  ;;  %v201_v55 = vmul.f32 %v673_v51, %v199_v37  ;;  %vm206_vm9 = vweird.f32 %v673_v51  ;;  %v653_v46 = vld [vmem:[%s929_s5 + $0x68] sm:$0xff] }
  0xc4   :  { %v168_v50 = vsel %vm167_vm7, %v671_v27, %v164_v47  ;;  %vm207_vm11 = vmor %vm205_vm10, %vm206_vm9  ;;  %v675_v14 = vpop.eup %674  ;;  %v469_v47 = vsel %vm60_vm0, %v645_v45, 0 }
  0xc5   :  { %v223_v53 = vsel %vm60_vm0, %v788_v24, 0.0  ;;  %v173_v54 = vsel %vm170_vm8, %v172_v48, %v168_v50  ;;  %v202_v57 = vsub.f32 1.0, %v201_v55  ;;  %v233_v15 = vmul.f32 32.0, %v675_v14  ;;  %v644_v48 = vld [vmem:[%s929_s5 + $0x20] sm:$0xff]  ;;  %v642_v55 = vld [vmem:[%s929_s5 + $0x10] sm:$0xff] }
  0xc6   :  { %224 = vadd.xlane.f32.xlu0 %v223_v53  ;;  %v174_v10 = vmul.f32 %v173_v54, %v149_v49  ;;  %vm237_vm13 = vweird.f32 %v675_v14  ;;  %v652_v49 = vld [vmem:[%s929_s5 + $0x60] sm:$0xff]  ;;  %v466_v50 = vsel %vm60_vm0, %v644_v48, 0  ;;  %v651_v53 = vld [vmem:[%s929_s5 + $0x58] sm:$0xff]  ;;  %v463_v54 = vsel %vm60_vm0, %v643_v52, 0 }
  0xc7   :  { %v203_v19 = vmul.f32 %v673_v51, %v202_v57  ;;  %v234_v33 = vsub.f32 1.0, %v233_v15  ;;  %v460_v57 = vsel %vm60_vm0, %v642_v55, 0 }
  0xc8   :  { %v562_v56 = vclamps-f32 %v174_v10, 1.0  ;;  %520 = vmatpush.bf16.xpose.msra.mxu2 %v496_v31  ;;  %v487_v10 = vsel %vm60_vm0, %v651_v53, 0 }
  0xc9   :  { %v204_v0 = vadd.f32 %v673_v51, %v203_v19  ;;  %v235_v17 = vmul.f32 %v675_v14, %v234_v33  ;;  %503 = vmatpush.bf16.xpose.msra.mxu1 %v469_v47  ;;  %658 = vmatpush.bf16.xpose.msra.mxu3 %v469_v47  ;;  %v649_v19 = vld [vmem:[%s929_s5 + $0x48] sm:$0xff] }
  0xca   :  { %v218_v61 = vadd.f32 1.0, %v562_v56  ;;  %v650_v56 = vld [vmem:[%s929_s5 + $0x50] sm:$0xff] }
  0xcb   :  { %v208_v3 = vsel %vm207_vm11, %v673_v51, %v204_v0  ;;  %v236_v18 = vadd.f32 %v675_v14, %v235_v17  ;;  %v490_v51 = vsel %vm60_vm0, %v652_v49, 0  ;;  %v481_v0 = vsel %vm60_vm0, %v649_v19, 0 }
  0xcc   :  { %v221_v63 = vmul.f32 %v218_v61, %v92_v58  ;;  %v213_v4 = vsel %vm210_vm12, %v212_v41, %v208_v3  ;;  %v484_v58 = vsel %vm60_vm0, %v650_v56, 0  ;;  %v641_v61 = vld [vmem:[%s929_s5 + $0x8] sm:$0xff]  ;;  %v648_v3 = vld [vmem:[%s929_s5 + $0x40] sm:$0xff] }
  0xcd   :  { %v214_v16 = vmul.f32 %v213_v4, %v189_v1  ;;  %v807_v23 = vsel %vm237_vm13, %v675_v14, %v236_v18  ;;  %v666_v18 = vld [vmem:[%s927_s3] ss:$0 sm:$0xff] }
  0xce   :  { %v226_v2 = vsel %vm60_vm0, %v221_v63, 0.0 }
  0xcf   :  { %227 = vadd.xlane.f32.xlu0 %v226_v2  ;;  %v563_v5 = vclamps-f32 %v214_v16, 1.0  ;;  %v640_v2 = vld [vmem:[%s929_s5] sm:$0xff] }
  0xd1   :  { %v219_v7 = vadd.f32 1.0, %v563_v5  ;;  %504 = vmatpush.bf16.xpose.msra.mxu1 %v466_v50  ;;  %659 = vmatpush.bf16.xpose.msra.mxu3 %v466_v50 }
  0xd3   :  { %v222_v8 = vmul.f32 %v219_v7, %v93_v6  ;;  %v454_v6 = vsel %vm60_vm0, %v640_v2, 0  ;;  %v478_v7 = vsel %vm60_vm0, %v648_v3, 0 }
  0xd5   :  { %v229_v9 = vsel %vm60_vm0, %v222_v8, 0.0 }
  0xd6   :  { %230 = vadd.xlane.f32.xlu1 %v229_v9 }
  0xd9   :  { %505 = vmatpush.bf16.xpose.msra.mxu1 %v463_v54  ;;  %660 = vmatpush.bf16.xpose.msra.mxu3 %v463_v54 }
  0xe1   :  { %506 = vmatpush.bf16.xpose.msra.mxu1 %v460_v57  ;;  %661 = vmatpush.bf16.xpose.msra.mxu3 %v460_v57 }
 0x139   :  { %v225_v26 = vpop.xlane.xlu0 %224 }
 0x13a   :  { %v239_v27 = vmul.f32 %v807_v23, %v225_v26 }
 0x13c   :  { %v817_v28 = vsub.f32 %v788_v24, %v239_v27  ;;  %v493_v24 = vsel %vm60_vm0, %v653_v46, 0 }
 0x13d   :  { %521 = vmatpush.bf16.xpose.msra.mxu2 %v493_v24 }
 0x13e   :  { %v245_v32 = vmul.f32 %v817_v28, %v817_v28 }
 0x140   :  { %v248_v34 = vsel %vm60_vm0, %v245_v32, 0.0 }
 0x141   :  { %249 = vadd.xlane.f32.xlu1 %v248_v34 }
 0x142   :  { %v228_v35 = vpop.xlane.xlu0 %227 }
 0x143   :  { %v240_v36 = vmul.f32 %v807_v23, %v228_v35 }
 0x145   :  { %v825_v37 = vsub.f32 %v221_v63, %v240_v36  ;;  %522 = vmatpush.bf16.xpose.msra.mxu2 %v490_v51  ;;  %v457_v63 = vsel %vm60_vm0, %v641_v61, 0 }
 0x146   :  { %507 = vmatpush.bf16.xpose.msra.mxu1 %v457_v63  ;;  %662 = vmatpush.bf16.xpose.msra.mxu3 %v457_v63 }
 0x147   :  { %v246_v38 = vmul.f32 %v825_v37, %v825_v37 }
 0x149   :  { %v251_v39 = vsel %vm60_vm0, %v246_v38, 0.0  ;;  %v231_v40 = vpop.xlane.xlu1 %230 }
 0x14a   :  { %252 = vadd.xlane.f32.xlu2 %v251_v39  ;;  %v241_v42 = vmul.f32 %v807_v23, %v231_v40 }
 0x14c   :  { %v831_v43 = vsub.f32 %v222_v8, %v241_v42 }
 0x14d   :  { %523 = vmatpush.bf16.xpose.msra.mxu2 %v487_v10 }
 0x14e   :  { %v247_v44 = vmul.f32 %v831_v43, %v831_v43  ;;  %508 = vmatpush.bf16.xpose.msra.mxu1 %v454_v6  ;;  %663 = vmatpush.bf16.xpose.msra.mxu3 %v454_v6 }
 0x150   :  { %v254_v11 = vsel %vm60_vm0, %v247_v44, 0.0 }
 0x152   :  { %255 = vadd.xlane.f32.xlu2 %v254_v11 }
 0x155   :  { %524 = vmatpush.bf16.xpose.msra.mxu2 %v484_v58 }
 0x15d   :  { %525 = vmatpush.bf16.xpose.msra.mxu2 %v481_v0 }
 0x165   :  { %526 = vmatpush.bf16.xpose.msra.mxu2 %v478_v7 }
 0x1b4   :  { %v250_v59 = vpop.xlane.xlu1 %249 }
 0x1b5   :  { %v257_v60 = vmul.f32 %v250_v59, %v807_v23 }
 0x1b7   :  { %v260_v62 = vadd.f32 1e-05, %v257_v60 }
 0x1b9   :  { %676 = vrsqrt.f32 %v260_v62  ;;  %vm269_vm15 = vweird.f32 %v260_v62 }
 0x1bd   :  { %v253_v41 = vpop.xlane.xlu2 %252 }
 0x1be   :  { %v258_v1 = vmul.f32 %v253_v41, %v807_v23 }
 0x1bf   :  { %v677_v4 = vpop.eup %676 }
 0x1c0   :  { %v264_v16 = vmul.f32 %v677_v4, %v260_v62  ;;  %v261_v5 = vadd.f32 1e-05, %v258_v1  ;;  %vm270_vm14 = vweird.f32 %v677_v4 }
 0x1c1   :  { %vm271_vm1 = vmor %vm269_vm15, %vm270_vm14 }
 0x1c2   :  { %v265_v8 = vmul.f32 %v677_v4, %v264_v16  ;;  %678 = vrsqrt.f32 %v261_v5  ;;  %vm279_vm4 = vweird.f32 %v261_v5 }
 0x1c4   :  { %v266_v9 = vmul.f32 0.5, %v265_v8 }
 0x1c5   :  { %v256_v14 = vpop.xlane.xlu2 %255 }
 0x1c6   :  { %v267_v12 = vsub.f32 1.5, %v266_v9  ;;  %v259_v17 = vmul.f32 %v256_v14, %v807_v23 }
 0x1c8   :  { %v679_v15 = vpop.eup %678  ;;  %v268_v33 = vmul.f32 %v677_v4, %v267_v12  ;;  %v262_v21 = vadd.f32 1e-05, %v259_v17 }
 0x1c9   :  { %v274_v20 = vmul.f32 %v679_v15, %v261_v5  ;;  %vm280_vm2 = vweird.f32 %v679_v15 }
 0x1ca   :  { %v272_v29 = vsel %vm271_vm1, %v677_v4, %v268_v33  ;;  %680 = vrsqrt.f32 %v262_v21  ;;  %vm281_vm5 = vmor %vm279_vm4, %vm280_vm2  ;;  %vm289_vm7 = vweird.f32 %v262_v21 }
 0x1cb   :  { %v293_v13 = vmul.f32 %v272_v29, %v817_v28  ;;  %v275_v25 = vmul.f32 %v679_v15, %v274_v20 }
 0x1cd   :  { %v300_v26 = vmul.f32 %v666_v18, %v293_v13  ;;  %v276_v27 = vmul.f32 0.5, %v275_v25 }
 0x1cf   :  { %v307_v30 = vadd.f32 %v667_v22, %v300_v26  ;;  %v277_v23 = vsub.f32 1.5, %v276_v27 }
 0x1d0   :  { %v681_v34 = vpop.eup %680 }
 0x1d1   :  { %v310_v31 = vpack.c.bf16 %v307_v30, %v307_v30  ;;  %v278_v32 = vmul.f32 %v679_v15, %v277_v23  ;;  %v284_v36 = vmul.f32 %v681_v34, %v262_v21  ;;  %vm290_vm6 = vweird.f32 %v681_v34 }
 0x1d2   :  { %vm291_vm8 = vmor %vm289_vm7, %vm290_vm6 }
 0x1d3   :  { %314 = vst.msk [vmem:[#allocation2] sm:$0xf] %vm313_vm3, %v310_v31  ;;  %v282_v35 = vsel %vm281_vm5, %v679_v15, %v278_v32  ;;  %v285_v28 = vmul.f32 %v681_v34, %v284_v36 }
 0x1d4   :  { %v294_v38 = vmul.f32 %v282_v35, %v825_v37 }
 0x1d5   :  { %v286_v40 = vmul.f32 0.5, %v285_v28 }
 0x1d6   :  { %v301_v39 = vmul.f32 %v666_v18, %v294_v38 }
 0x1d7   :  { %v287_v44 = vsub.f32 1.5, %v286_v40 }
 0x1d8   :  { %v308_v42 = vadd.f32 %v667_v22, %v301_v39 }
 0x1d9   :  { %v288_v45 = vmul.f32 %v681_v34, %v287_v44 }
 0x1da   :  { %v311_v11 = vpack.c.bf16 %v308_v42, %v308_v42 }
 0x1db   :  { %v292_v46 = vsel %vm291_vm8, %v681_v34, %v288_v45 }
 0x1dc   :  { %315 = vst.msk [vmem:[#allocation2 + $0x4] sm:$0xf] %vm313_vm3, %v311_v11  ;;  %v295_v47 = vmul.f32 %v292_v46, %v831_v43  ;;  %v352_v43 = vld [vmem:[%s930_s6] sm:$0x3] }
 0x1dd   :  { %v354_v53 = vperm.slane %v352_v43, 0  ;;  %v355_v55 = vperm.slane %v352_v43, 1 }
 0x1de   :  { %v302_v24 = vmul.f32 %v666_v18, %v295_v47 }
 0x1e0   :  { %v309_v48 = vadd.f32 %v667_v22, %v302_v24 }
 0x1e2   :  { %v312_v50 = vpack.c.bf16 %v309_v48, %v309_v48 }
 0x1e3   :  { %v639_v49 = vld [vmem:[#allocation2] sm:$0xff] }
 0x1e4   :  { %632 = vmatmul.msk.bf16.vlgmr.msra.gmra.mxu1 %vm60_vm0, %v639_v49  ;;  %634 = vmatmul.msk.bf16.vlgmr.msra.gmra.mxu2 %vm60_vm0, %v639_v49  ;;  %316 = vst.msk [vmem:[#allocation2 + $0x8] sm:$0xf] %vm313_vm3, %v312_v50 }
 0x1eb   :  { %v319_v37 = vld [vmem:[#allocation2 + $0x8] sm:$0xf] }
 0x1ec   :  { %v363_v51 = vunpack.c.l.b16 %v319_v37 }
 0x1ee   :  { %v365_v52 = vpack.c.b16 %v363_v51, %v363_v51 }
 0x1f0   :  { %633 = vmatmul.msk.bf16.vlgmr.msra.gmra.mxu3 %vm60_vm0, %v365_v52 }
 0x1f4   :  { %635 = vmatmul.msk.bf16.gmra.mxu2 %vm60_vm0, %v365_v52 }
 0x261   :  { %v510_v54 = vpop.f32.mrf.mxu1 }
 0x262   :  { %v511_v10 = vadd.f32 %v510_v54, %v354_v53 }
 0x264   :  { %537 = vst [vmem:[%s931_s7] sm:$0xff] %v511_v10 }
 0x267   :  { %v528_v56 = vpop.f32.mrf.mxu2 }
 0x268   :  { %v529_v57 = vadd.f32 %v528_v56, %v355_v55 }
 0x269   :  { %v512_v58 = vpop.f32.mrf.mxu1 }
 0x26a   :  { %538 = vst [vmem:[%s931_s7 + $0x8] sm:$0xff] %v529_v57  ;;  %v513_v59 = vadd.f32 %v512_v58, %v354_v53 }
 0x26c   :  { %539 = vst [vmem:[%s931_s7 + $0x10] sm:$0xff] %v513_v59 }
 0x26f   :  { %v530_v60 = vpop.f32.mrf.mxu2 }
 0x270   :  { %v531_v61 = vadd.f32 %v530_v60, %v355_v55 }
 0x272   :  { %540 = vst [vmem:[%s931_s7 + $0x18] sm:$0xff] %v531_v61 }
 0x273   :  { %v515_v19 = vpop.f32.mrf.mxu3 }
 0x274   :  { %v516_v62 = vadd.f32 %v515_v19, %v354_v53 }
 0x276   :  { %541 = vst [vmem:[%s931_s7 + $0x20] sm:$0xff] %v516_v62 }
 0x277   :  { %v533_v63 = vpop.f32.mrf.mxu2 }
 0x278   :  { %v534_v0 = vadd.f32 %v533_v63, %v355_v55 }
 0x27a   :  { %542 = vst [vmem:[%s931_s7 + $0x28] sm:$0xff] %v534_v0 }
 0x27b   :  { %v517_v41 = vpop.f32.mrf.mxu3 }
 0x27f   :  { %v535_v1 = vpop.f32.mrf.mxu2 }

</bundles_post_ra>
